<compile_context>
chip_gen: v7x
topology: tpu7x:2x2x1
jax: 0.10.0
libtpu: 0.0.40
codegen_flags: <defaults>
</compile_context>

<pallas_src>
import functools

import jax
import jax.numpy as jnp
from jax.experimental import pallas as pl
from jax.experimental.pallas import tpu as pltpu

IN_DIM = 12 * 3 + 5 * 3 + 1 * 3   # 54
HID_DIM = 97
OUT_DIM = 3

IN_PAD = 64     # 54 -> 64  (lane-friendly K for fc1)
HID_PAD = 128   # 97 -> 128 (full (8,128) tile for hidden activations / fc2 K)


def _round_up(x, m):
    return ((x + m - 1) // m) * m


def h97_kernel(x_ref, w1_ref, b1_ref, w2_ref, b2_ref, o_ref):
    # fc1: bf16 inputs, f32 accumulation on the MXU
    x = x_ref[...]                                                   # (TB, 64) bf16
    h = jnp.dot(x, w1_ref[...], preferred_element_type=jnp.float32)  # (TB, 128) f32
    # dropout(p=0.3) is identity at inference time.
    # TODO(synk): training-mode dropout (Bernoulli mask / scaling) not implemented.
    h = jnp.maximum(h + b1_ref[...], 0.0)                            # bias + ReLU in f32

    # fc2: re-quantize hidden to bf16 for the MXU, accumulate in f32
    logits = jnp.dot(h.astype(jnp.bfloat16), w2_ref[...],
                     preferred_element_type=jnp.float32) + b2_ref[...]  # (TB, 3) f32

    # softmax over the class axis (last dim here == PyTorch dim=1), exact f32 math
    m = jnp.max(logits, axis=-1, keepdims=True)
    e = jnp.exp(logits - m)
    s = jnp.sum(e, axis=-1, keepdims=True)
    o_ref[...] = e / s


@functools.partial(jax.jit, static_argnames=("block_rows",))
def h97_forward(x, w1, b1, w2, b2, *, block_rows=1024):
    """x: (B, 54) float32. w1:(64,128) bf16, b1:(1,128) f32, w2:(128,3) bf16, b2:(1,3) f32."""
    B = x.shape[0]
    # Row tile: multiple of 8 (sublane), capped by block_rows, no bigger than needed.
    TB = min(_round_up(block_rows, 8), _round_up(B, 8))
    Bp = _round_up(B, TB)
    grid = (Bp // TB,)

    # Pad batch rows / input features with zeros and cast the streamed input to bf16.
    x_p = jnp.pad(x, ((0, Bp - B), (0, IN_PAD - IN_DIM))).astype(jnp.bfloat16)

    bytes_accessed = (x_p.size * 2 + Bp * OUT_DIM * 4
                      + w1.size * 2 + w2.size * 2 + b1.size * 4 + b2.size * 4)
    cost = pl.CostEstimate(
        flops=2 * Bp * (IN_PAD * HID_PAD + HID_PAD * OUT_DIM),
        transcendentals=Bp * OUT_DIM,
        bytes_accessed=bytes_accessed,
    )

    out = pl.pallas_call(
        h97_kernel,
        out_shape=jax.ShapeDtypeStruct((Bp, OUT_DIM), jnp.float32),
        grid=grid,
        in_specs=[
            pl.BlockSpec((TB, IN_PAD), lambda i: (i, 0)),       # x tile streams per step
            pl.BlockSpec((IN_PAD, HID_PAD), lambda i: (0, 0)),  # weights stay resident
            pl.BlockSpec((1, HID_PAD), lambda i: (0, 0)),
            pl.BlockSpec((HID_PAD, OUT_DIM), lambda i: (0, 0)),
            pl.BlockSpec((1, OUT_DIM), lambda i: (0, 0)),
        ],
        out_specs=pl.BlockSpec((TB, OUT_DIM), lambda i: (i, 0)),
        compiler_params=pltpu.CompilerParams(
            dimension_semantics=("parallel",),  # megacore sharding on v7x
        ),
        cost_estimate=cost,
    )(x_p, w1, b1, w2, b2)

    return out[:B]


def init_params(key):
    """Deterministic init mimicking the PyTorch module's __init__/_init_weights.
    Returns PyTorch-layout params: w1 (97,54), b1 (97,), w2 (3,97), b2 (3,)."""
    k = jax.random.split(key, 8)

    # fc1: PyTorch default Linear init is U(-1/sqrt(fan_in), 1/sqrt(fan_in))
    bound1 = 1.0 / jnp.sqrt(jnp.float32(IN_DIM))
    w1 = jax.random.uniform(k[0], (HID_DIM, IN_DIM), jnp.float32, -bound1, bound1)
    b1 = jax.random.uniform(k[1], (HID_DIM,), jnp.float32, -bound1, bound1)
    # _init_weights overrides slices of fc1.weight (columns = input features):
    w1 = w1.at[:, :36].set(
        jax.random.uniform(k[2], (HID_DIM, 36), jnp.float32, -0.3, 0.3))
    w1 = w1.at[:, 51:].set(
        jax.random.uniform(k[3], (HID_DIM, IN_DIM - 51), jnp.float32, -0.15, 0.15))
    w1 = w1.at[:, 36:50].set(
        jax.random.uniform(k[4], (HID_DIM, 14), jnp.float32, -1.0, 1.0))
    # (column 50 keeps the default init, as in the PyTorch code)

    # fc2: default init
    bound2 = 1.0 / jnp.sqrt(jnp.float32(HID_DIM))
    w2 = jax.random.uniform(k[5], (OUT_DIM, HID_DIM), jnp.float32, -bound2, bound2)
    b2 = jax.random.uniform(k[6], (OUT_DIM,), jnp.float32, -bound2, bound2)
    return w1, b1, w2, b2


def prepare_params(w1, b1, w2, b2):
    """Transpose to (in, out), zero-pad to MXU/vreg-friendly shapes, cast matmul
    operands to bf16. Zero padding keeps the math identical (padded hidden units
    are exactly 0 after ReLU and multiply zero rows of W2)."""
    w1t = jnp.pad(w1.T, ((0, IN_PAD - IN_DIM), (0, HID_PAD - HID_DIM)))
    b1p = jnp.pad(b1, (0, HID_PAD - HID_DIM)).reshape(1, HID_PAD).astype(jnp.float32)
    w2t = jnp.pad(w2.T, ((0, HID_PAD - HID_DIM), (0, 0)))
    b2p = b2.reshape(1, OUT_DIM).astype(jnp.float32)
    return (w1t.astype(jnp.bfloat16), b1p, w2t.astype(jnp.bfloat16), b2p)


def reference_forward(x, w1k, b1k, w2k, b2k):
    """Pure-JAX reference matching the kernel's numerics (bf16 matmul operands,
    f32 accumulation / elementwise)."""
    xc = jnp.pad(x, ((0, 0), (0, IN_PAD - IN_DIM))).astype(jnp.bfloat16).astype(jnp.float32)
    w1f = w1k.astype(jnp.float32)
    w2f = w2k.astype(jnp.float32)
    h = jnp.maximum(xc @ w1f + b1k, 0.0)
    hq = h.astype(jnp.bfloat16).astype(jnp.float32)
    logits = hq @ w2f + b2k
    return jax.nn.softmax(logits, axis=1)


if __name__ == "__main__":
    key = jax.random.PRNGKey(0)
    k_param, k_x = jax.random.split(key)

    w1, b1, w2, b2 = init_params(k_param)
    w1k, b1k, w2k, b2k = prepare_params(w1, b1, w2, b2)

    # Case 1: small single-tile batch.
    B = 8
    x = jax.random.normal(k_x, (B, IN_DIM), jnp.float32)
    out = jax.block_until_ready(h97_forward(x, w1k, b1k, w2k, b2k))
    ref = reference_forward(x, w1k, b1k, w2k, b2k)
    assert out.shape == (B, OUT_DIM)
    assert jnp.allclose(out, ref, atol=2e-3, rtol=2e-3), (
        f"max abs err {jnp.max(jnp.abs(out - ref))}")
    assert jnp.allclose(jnp.sum(out, axis=1), 1.0, atol=1e-5)

    # Case 2: ragged batch spanning multiple grid steps (exercises row padding).
    B2 = 33
    x2 = jax.random.normal(jax.random.PRNGKey(7), (B2, IN_DIM), jnp.float32)
    out2 = jax.block_until_ready(h97_forward(x2, w1k, b1k, w2k, b2k, block_rows=16))
    ref2 = reference_forward(x2, w1k, b1k, w2k, b2k)
    assert out2.shape == (B2, OUT_DIM)
    assert jnp.allclose(out2, ref2, atol=2e-3, rtol=2e-3), (
        f"max abs err {jnp.max(jnp.abs(out2 - ref2))}")
    assert jnp.allclose(jnp.sum(out2, axis=1), 1.0, atol=1e-5)

    print("KERNEL_OK")
</pallas_src>

<mosaic_0001>
module attributes {stable_mosaic.version = 11 : i64} {
  func.func @h97_kernel(%arg0: i32, %arg1: memref<8x64xbf16, #tpu.memory_space<vmem>>, %arg2: memref<64x128xbf16, #tpu.memory_space<vmem>>, %arg3: memref<1x128xf32, #tpu.memory_space<vmem>>, %arg4: memref<128x3xbf16, #tpu.memory_space<vmem>>, %arg5: memref<1x3xf32, #tpu.memory_space<vmem>>, %arg6: memref<8x3xf32, #tpu.memory_space<vmem>>) attributes {dimension_semantics = [#tpu.dimension_semantics<parallel>], iteration_bounds = array<i64: 1>, scalar_prefetch = 0 : i64, scratch_operands = 0 : i64, tpu.core_type = #tpu.core_type<tc>, window_params = [{transform_indices = @transform_0, window_bounds = array<i64: 8, 64>}, {pipeline_mode = #tpu.pipeline_mode<synchronous>, transform_indices = @transform_1, window_bounds = array<i64: 64, 128>}, {pipeline_mode = #tpu.pipeline_mode<synchronous>, transform_indices = @transform_2, window_bounds = array<i64: 1, 128>}, {pipeline_mode = #tpu.pipeline_mode<synchronous>, transform_indices = @transform_3, window_bounds = array<i64: 128, 3>}, {pipeline_mode = #tpu.pipeline_mode<synchronous>, transform_indices = @transform_4, window_bounds = array<i64: 1, 3>}, {transform_indices = @transform_5, window_bounds = array<i64: 8, 3>}]} {
    %c0 = arith.constant 0 : index
    %c0_0 = arith.constant 0 : index
    %0 = vector.load %arg1[%c0, %c0_0] : memref<8x64xbf16, #tpu.memory_space<vmem>>, vector<8x64xbf16>
    %c0_1 = arith.constant 0 : index
    %c0_2 = arith.constant 0 : index
    %1 = vector.load %arg2[%c0_1, %c0_2] : memref<64x128xbf16, #tpu.memory_space<vmem>>, vector<64x128xbf16>
    %cst = arith.constant dense<0.000000e+00> : vector<8x128xf32>
    %2 = tpu.matmul %0, %1, %cst {dimension_numbers = #tpu.dot_dimension_numbers<[1], [0], [0], [1], [0, 0, 1, 1], [], []>} : vector<8x64xbf16>, vector<64x128xbf16>, vector<8x128xf32> -> vector<8x128xf32>
    %c0_3 = arith.constant 0 : index
    %c0_4 = arith.constant 0 : index
    %3 = vector.load %arg3[%c0_3, %c0_4] : memref<1x128xf32, #tpu.memory_space<vmem>>, vector<1x128xf32>
    %4 = vector.broadcast %3 : vector<1x128xf32> to vector<8x128xf32>
    %5 = arith.addf %2, %4 : vector<8x128xf32>
    %cst_5 = arith.constant 0.000000e+00 : f32
    %6 = vector.broadcast %cst_5 : f32 to vector<8x128xf32>
    %7 = arith.maximumf %5, %6 : vector<8x128xf32>
    %8 = arith.truncf %7 : vector<8x128xf32> to vector<8x128xbf16>
    %c0_6 = arith.constant 0 : index
    %c0_7 = arith.constant 0 : index
    %9 = vector.load %arg4[%c0_6, %c0_7] : memref<128x3xbf16, #tpu.memory_space<vmem>>, vector<128x3xbf16>
    %cst_8 = arith.constant dense<0.000000e+00> : vector<8x3xf32>
    %10 = tpu.matmul %8, %9, %cst_8 {dimension_numbers = #tpu.dot_dimension_numbers<[1], [0], [0], [1], [0, 0, 1, 1], [], []>} : vector<8x128xbf16>, vector<128x3xbf16>, vector<8x3xf32> -> vector<8x3xf32>
    %c0_9 = arith.constant 0 : index
    %c0_10 = arith.constant 0 : index
    %11 = vector.load %arg5[%c0_9, %c0_10] : memref<1x3xf32, #tpu.memory_space<vmem>>, vector<1x3xf32>
    %12 = vector.broadcast %11 : vector<1x3xf32> to vector<8x3xf32>
    %13 = arith.addf %10, %12 : vector<8x3xf32>
    %cst_11 = arith.constant dense<0xFF800000> : vector<8xf32>
    %14 = vector.multi_reduction <maximumf>, %13, %cst_11 [1] : vector<8x3xf32> to vector<8xf32>
    %15 = vector.shape_cast %14 : vector<8xf32> to vector<8x1xf32>
    %16 = vector.broadcast %15 : vector<8x1xf32> to vector<8x3xf32>
    %17 = arith.subf %13, %16 : vector<8x3xf32>
    %18 = math.exp %17 : vector<8x3xf32>
    %cst_12 = arith.constant dense<0.000000e+00> : vector<8xf32>
    %19 = vector.multi_reduction <add>, %18, %cst_12 [1] : vector<8x3xf32> to vector<8xf32>
    %20 = vector.shape_cast %19 : vector<8xf32> to vector<8x1xf32>
    %21 = vector.broadcast %20 : vector<8x1xf32> to vector<8x3xf32>
    %22 = arith.divf %18, %21 : vector<8x3xf32>
    %c0_13 = arith.constant 0 : index
    %c0_14 = arith.constant 0 : index
    %23 = vector.load %arg6[%c0_13, %c0_14] : memref<8x3xf32, #tpu.memory_space<vmem>>, vector<8x3xf32>
    tpu.vector_store %arg6[%c0_13, %c0_14], %22 {strides = array<i32>} : memref<8x3xf32, #tpu.memory_space<vmem>>, vector<8x3xf32>,
    return
  }
  func.func @transform_0(%arg0: i32) -> (i32, i32) {
    %c0_i32 = arith.constant 0 : i32
    %c0_i32_0 = arith.constant 0 : i32
    return %arg0, %c0_i32 : i32, i32
  }
  func.func @transform_1(%arg0: i32) -> (i32, i32) {
    %c0_i32 = arith.constant 0 : i32
    %c0_i32_0 = arith.constant 0 : i32
    %c0_i32_1 = arith.constant 0 : i32
    return %c0_i32, %c0_i32_0 : i32, i32
  }
  func.func @transform_2(%arg0: i32) -> (i32, i32) {
    %c0_i32 = arith.constant 0 : i32
    %c0_i32_0 = arith.constant 0 : i32
    %c0_i32_1 = arith.constant 0 : i32
    return %c0_i32, %c0_i32_0 : i32, i32
  }
  func.func @transform_3(%arg0: i32) -> (i32, i32) {
    %c0_i32 = arith.constant 0 : i32
    %c0_i32_0 = arith.constant 0 : i32
    %c0_i32_1 = arith.constant 0 : i32
    return %c0_i32, %c0_i32_0 : i32, i32
  }
  func.func @transform_4(%arg0: i32) -> (i32, i32) {
    %c0_i32 = arith.constant 0 : i32
    %c0_i32_0 = arith.constant 0 : i32
    %c0_i32_1 = arith.constant 0 : i32
    return %c0_i32, %c0_i32_0 : i32, i32
  }
  func.func @transform_5(%arg0: i32) -> (i32, i32) {
    %c0_i32 = arith.constant 0 : i32
    %c0_i32_0 = arith.constant 0 : i32
    return %arg0, %c0_i32 : i32, i32
  }
}

</mosaic_0001>

<bundles_post_ra>
// kernel: h97_forward.1
= control target key start
LH: loop header
LB: loop body
LE: loop exit
PB: predicated region body
PF: predicated region fallthrough
CT: control target
= control target key end

     0   :  { %v314_v0 = vmov 0.0   ;;  %vm315_vm0 = vmmov 0   ;;  %vm61_vm1 = vcmask 523264   ;;  %vm218_vm2 = vcmask 23552   ;;  %s397_s1 = inlined_call_operand.vmem [shape: bf16[64,128], index: 1, kind: input, shape index: {}]   ;;  %s398_s3 = inlined_call_operand.vmem [shape: bf16[128,3], index: 3, kind: input, shape index: {}]   ;;  %s399_s0 = inlined_call_operand.vmem [shape: bf16[8,64], index: 0, kind: input, shape index: {}]   ;;  %s400_s2 = inlined_call_operand.vmem [shape: f32[1,128], index: 2, kind: input, shape index: {}]   ;;  %s401_s4 = inlined_call_operand.vmem [shape: f32[1,3], index: 4, kind: input, shape index: {}]   ;;  %s402_s5 = inlined_call_operand.vmem [shape: f32[8,3], index: 5, kind: output, shape index: {}]  }
   0x1   :  { %264 = vmatprep.subr.bf16.mxu0 %v314_v0  ;;  %v298_v1 = vld [vmem:[%s397_s1] sm:$0xff]   ;;  %272 = vmatprep.mubr.msk.bf16.mxu0 %vm315_vm0, %v314_v0  ;;  %v299_v2 = vld [vmem:[%s397_s1 + $0x8] sm:$0xff]   ;;  %v300_v4 = vld [vmem:[%s397_s1 + $0x10] sm:$0xff]  }
   0x2   :  { %276 = vmatprep.subr.bf16.mxu1 %v314_v0  ;;  %292 = vmatprep.mubr.msk.bf16.mxu1 %vm315_vm0, %v314_v0  ;;  %v302_v3 = vld [vmem:[%s398_s3] sm:$0xff]   ;;  %v303_v5 = vld [vmem:[%s398_s3 + $0x8] sm:$0xff]   ;;  %v301_v6 = vld [vmem:[%s397_s1 + $0x18] sm:$0xff]  }
   0x3   :  { %265 = vmatpush3.bf16.msra.mxu0 %v298_v1  ;;  %277 = vmatpush3.bf16.msra.mxu1 %v302_v3  ;;  %v304_v7 = vld [vmem:[%s398_s3 + $0x10] sm:$0xff]   ;;  %v21_v8 = vld [vmem:[%s399_s0] sm:$0xf]  ;;  %v305_v9 = vld [vmem:[%s398_s3 + $0x18] sm:$0xff]  }
   0x4   :  { %266 = vmatprep.subr.bf16.mxu0 %v314_v0  ;;  %278 = vmatprep.subr.bf16.mxu1 %v314_v0  ;;  %v306_v10 = vld [vmem:[%s398_s3 + $0x20] sm:$0xff]   ;;  %v307_v11 = vld [vmem:[%s398_s3 + $0x28] sm:$0xff]   ;;  %v308_v12 = vld [vmem:[%s398_s3 + $0x30] sm:$0xff]  }
   0x5   :  { %v309_v13 = vld [vmem:[%s398_s3 + $0x38] sm:$0xff]   ;;  %v235_v14 = vld [vmem:[%s400_s2] ss:$0 sm:$0xff] }
   0x6   :  { %v241_v22 = vld [vmem:[%s401_s4] ss:$0 sm:$0xff] }
   0x7   :  { %267 = vmatpush3.bf16.msra.mxu0 %v299_v2  ;;  %279 = vmatpush3.bf16.msra.mxu1 %v303_v5 }
   0x8   :  { %268 = vmatprep.subr.bf16.mxu0 %v314_v0  ;;  %280 = vmatprep.subr.bf16.mxu1 %v314_v0 }
   0xb   :  { %269 = vmatpush3.bf16.msra.mxu0 %v300_v4  ;;  %281 = vmatpush3.bf16.msra.mxu1 %v304_v7 }
   0xc   :  { %270 = vmatprep.subr.bf16.mxu0 %v314_v0  ;;  %282 = vmatprep.subr.bf16.mxu1 %v314_v0 }
   0xf   :  { %271 = vmatpush3.bf16.msra.mxu0 %v301_v6  ;;  %283 = vmatpush3.bf16.msra.mxu1 %v305_v9 }
  0x10   :  { %284 = vmatprep.subr.bf16.mxu1 %v314_v0 }
  0x12   :  { %273 = vmatmul.mubr.msk.bf16.vlgmr.msra.gmra.mrb[0].mxu0 %vm61_vm1, %v21_v8 }
  0x13   :  { %285 = vmatpush3.bf16.msra.mxu1 %v306_v10 }
  0x14   :  { %286 = vmatprep.subr.bf16.mxu1 %v314_v0 }
  0x17   :  { %287 = vmatpush3.bf16.msra.mxu1 %v307_v11 }
  0x18   :  { %288 = vmatprep.subr.bf16.mxu1 %v314_v0 }
  0x1b   :  { %289 = vmatpush3.bf16.msra.mxu1 %v308_v12 }
  0x1c   :  { %290 = vmatprep.subr.bf16.mxu1 %v314_v0 }
  0x1f   :  { %291 = vmatpush3.bf16.msra.mxu1 %v309_v13 }
  0xe5   :  { %v99_v15 = vpop.f32.mrb[0].mxu0 }
  0xe6   :  { %v100_v16 = vadd.f32 %v235_v14, %v99_v15  ;;  %v274_v17 = vpop.f32.mrb[1].mxu0 }
  0xe7   :  { %v102_v18 = vpop.f32.mrb[2].mxu0 }
  0xe8   :  { %v105_v19 = vmax.f32 %v100_v16, 0.0  ;;  %v275_v20 = vpop.f32.mrb[3].mxu0 }
  0xea   :  { %v106_v21 = vpack.c.bf16 %v105_v19, %v105_v19 }
  0xec   :  { %293 = vmatmul.mubr.bf16.vlgmr.msra.gmra.mrb[0].mxu1 %v106_v21 }
 0x1bf   :  { %v212_v23 = vpop.f32.mrb[0].mxu1 }
 0x1c0   :  { %v213_v24 = vadd.f32 %v241_v22, %v212_v23  ;;  %v294_v25 = vpop.f32.mrb[1].mxu1 }
 0x1c1   :  { %v215_v26 = vpop.f32.mrb[2].mxu1 }
 0x1c2   :  { %v295_v27 = vpop.f32.mrb[3].mxu1  ;;  %v219_v28 = vsel %vm218_vm2, %v213_v24, -inf }
 0x1c3   :  { %220 = vmax.xlane.f32.xlu0 %v219_v28 }
 0x250   :  { %v221_v29 = vpop.xlane.xlu0 %220 }
 0x251   :  { %v222_v30 = vsub.f32 %v213_v24, %v221_v29 }
 0x253   :  { %v223_v31 = vmul.f32 1.442695, %v222_v30 }
 0x255   :  { %310 = vpow2.f32 %v223_v31 }
 0x25f   :  { %v311_v32 = vpop.eup %310 }
 0x260   :  { %v225_v33 = vsel %vm218_vm2, %v311_v32, 0.0 }
 0x261   :  { %226 = vadd.xlane.f32.xlu0 %v225_v33 }
 0x2ee   :  { %v227_v34 = vpop.xlane.xlu0 %226 }
 0x2ef   :  { %312 = vrcp.f32 %v227_v34 }
 0x2f9   :  { %v313_v35 = vpop.eup %312 }
 0x2fa   :  { %v229_v36 = vmul.f32 %v313_v35, %v311_v32 }
 0x2fc   :  { %230 = vst.msk [vmem:[%s402_s5] sm:$0xff] %vm218_vm2, %v229_v36 }

</bundles_post_ra>
